<compile_context>
chip_gen: v7x
topology: tpu7x:2x2x1
jax: 0.10.0
libtpu: 0.0.40
codegen_flags: <defaults>
</compile_context>

<pallas_src>
import jax
import jax.numpy as jnp
from jax.experimental import pallas as pl
from jax.experimental.pallas import tpu as pltpu

_LANE = 128          # vreg lane width
_MAX_HW_TILE = 2048  # lanes of x per grid step (per row tile)


def _cdiv(a, b):
    return -(-a // b)


def _round_up(a, b):
    return _cdiv(a, b) * b


def _make_kernel(n_chunks):
    def kernel(x_ref, w_ref, sel_ref, b_ref, o_ref, acc_ref):
        # x_ref:   (rows_tile, hw_tile)   rows = b_tile * C
        # w_ref:   (rows_tile, F)         row-replicated, pre-scaled by 1/(H*W)
        # sel_ref: (b_tile, rows_tile)    block-diagonal 0/1 selection matrix
        # b_ref:   (1, F)
        # o_ref:   (b_tile, F)
        # acc_ref: (rows_tile, 128) f32 scratch, resident across the hw axis
        hw_i = pl.program_id(1)

        @pl.when(hw_i == 0)
        def _init():
            acc_ref[...] = jnp.zeros_like(acc_ref)

        # Hot loop: lane-shaped partial sums, VPU adds only (no XLU per step);
        # chunk-wise upcast keeps bf16 inputs from doubling live VMEM/vregs.
        psum = x_ref[:, 0:_LANE].astype(jnp.float32)
        for c in range(1, n_chunks):
            psum = psum + x_ref[:, c * _LANE:(c + 1) * _LANE].astype(jnp.float32)
        acc_ref[...] += psum

        @pl.when(hw_i == pl.num_programs(1) - 1)
        def _finalize():
            # Single cross-lane reduce for the whole row tile (XLU, once).
            pooled = jnp.sum(acc_ref[...], axis=-1, keepdims=True)        # (rows, 1)
            # 1x1 conv on pooled features == dense:
            #   out[b, f] = sum_c pooled[b*C + c] * w[c, f] / (H*W) + bias[f]
            # w_ref rows already carry the 1/(H*W) scale; sel regroups rows by batch.
            z = pooled * w_ref[...].astype(jnp.float32)                    # (rows, F)
            y = jnp.dot(sel_ref[...], z,
                        preferred_element_type=jnp.float32)                # (b_tile, F)
            y = y + b_ref[...].astype(jnp.float32)
            y = y * jax.nn.sigmoid(y)                                      # SiLU
            o_ref[...] = y.astype(o_ref.dtype)

    return kernel


def _choose_tiles(B, C, HW, itemsize):
    # Spatial (lane) tile: split HW as evenly as possible into <= 2048-lane tiles,
    # each rounded up to a multiple of 128.
    n_hw = _cdiv(HW, _MAX_HW_TILE)
    hw_tile = _round_up(_cdiv(HW, n_hw), _LANE)
    hw_pad = n_hw * hw_tile

    # Batch tile: a divisor of B with (b_tile % 8 == 0 or b_tile == B) so both the
    # x block (b_tile*C sublanes) and the (b_tile, F) output block satisfy the
    # (8, 128) tiling rule.  Largest one whose double-buffered x block fits ~8 MiB.
    budget = 8 * 1024 * 1024
    aligned = [d for d in range(1, B + 1) if B % d == 0 and (d % 8 == 0 or d == B)]
    b_tile = min(aligned)
    for d in sorted(aligned, reverse=True):
        if 2 * d * C * hw_tile * itemsize <= budget:
            b_tile = d
            break
    return b_tile, hw_tile, hw_pad, n_hw


def global_average_pooling_with_conv(x, weight, bias):
    """x: (B, C, *spatial) for dim in {1,2,3}; weight: (F, C) from Conv2d(C, F, 1); bias: (F,)."""
    if isinstance(x, (tuple, list)):   # module also accepts tuples of tensors
        return tuple(global_average_pooling_with_conv(xi, weight, bias) for xi in x)

    B, C = x.shape[0], x.shape[1]
    HW = 1
    for s in x.shape[2:]:
        HW *= s
    F = weight.shape[0]
    itemsize = jnp.dtype(x.dtype).itemsize

    b_tile, hw_tile, hw_pad, n_hw = _choose_tiles(B, C, HW, itemsize)
    rows_tile = b_tile * C

    # Flatten spatial dims and pack (B, C) densely onto sublanes.
    x_flat = x.reshape(B * C, HW)
    if hw_pad != HW:
        # Zero padding is exact: padded lanes contribute 0 to the sums and the
        # 1/(H*W) scale below uses the true spatial size.
        x_flat = jnp.pad(x_flat, ((0, 0), (0, hw_pad - HW)))

    # Fold the mean scale into the conv weight (exact) and row-replicate it per
    # batch tile; sel is the 0/1 block-diagonal matrix regrouping (b*C+c) -> (b, c).
    w_scaled = weight.T.astype(jnp.float32) / float(HW)               # (C, F)
    w_rows = jnp.tile(w_scaled, (b_tile, 1))                          # (rows_tile, F)
    sel = (jnp.arange(rows_tile, dtype=jnp.int32)[None, :] // C
           == jnp.arange(b_tile, dtype=jnp.int32)[:, None]).astype(jnp.float32)
    b2d = bias.reshape(1, F).astype(jnp.float32)

    n_b = B // b_tile
    n_chunks = hw_tile // _LANE

    cost = pl.CostEstimate(
        flops=int(B * C * HW + 2 * B * C * F + 4 * B * F),
        transcendentals=int(B * F),
        bytes_accessed=int(x_flat.size * itemsize + w_rows.size * 4
                           + sel.size * 4 + b2d.size * 4 + B * F * itemsize),
    )

    out = pl.pallas_call(
        _make_kernel(n_chunks),
        out_shape=jax.ShapeDtypeStruct((B, F), x.dtype),
        grid_spec=pltpu.PrefetchScalarGridSpec(
            num_scalar_prefetch=0,
            grid=(n_b, n_hw),                                   # reduction axis LAST
            in_specs=[
                pl.BlockSpec((rows_tile, hw_tile), lambda bi, hi: (bi, hi)),  # x
                pl.BlockSpec((rows_tile, F), lambda bi, hi: (0, 0)),          # w_rows
                pl.BlockSpec((b_tile, rows_tile), lambda bi, hi: (0, 0)),     # sel
                pl.BlockSpec((1, F), lambda bi, hi: (0, 0)),                  # bias
            ],
            out_specs=pl.BlockSpec((b_tile, F), lambda bi, hi: (bi, 0)),      # resident over hw
            scratch_shapes=[pltpu.VMEM((rows_tile, _LANE), jnp.float32)],
        ),
        compiler_params=pltpu.CompilerParams(
            dimension_semantics=("parallel", "arbitrary"),
            vmem_limit_bytes=32 * 1024 * 1024,
        ),
        cost_estimate=cost,
    )(x_flat, w_rows, sel, b2d)
    return out
    # TODO(synk): dropout branch (dropout=None by default) is not implemented.


def reference(x, weight, bias):
    pooled = jnp.mean(x.reshape(x.shape[0], x.shape[1], -1), axis=-1)   # (B, C)
    y = pooled @ weight.T + bias                                        # (B, F)
    return y * jax.nn.sigmoid(y)


if __name__ == "__main__":
    # Small shapes consistent with the module (in_channels=C, num_features=F).
    B, C, H, W = 2, 4, 16, 16
    F = 32

    key = jax.random.PRNGKey(0)
    kx, kw, kb = jax.random.split(key, 3)
    x = jax.random.normal(kx, (B, C, H, W), dtype=jnp.float32)
    weight = jax.random.normal(kw, (F, C), dtype=jnp.float32) * 0.1     # Conv2d(C, F, 1).weight
    bias = jax.random.normal(kb, (F,), dtype=jnp.float32) * 0.1         # Conv2d(C, F, 1).bias

    out = global_average_pooling_with_conv(x, weight, bias)
    out = jax.block_until_ready(out)

    ref = reference(x, weight, bias)
    assert out.shape == (B, F)
    assert jnp.allclose(out, ref, atol=1e-5, rtol=1e-5), float(jnp.max(jnp.abs(out - ref)))
    print("KERNEL_OK")
</pallas_src>

<mosaic_0001>
module attributes {stable_mosaic.version = 11 : i64} {
  func.func @kernel(%arg0: i32, %arg1: i32, %arg2: memref<8x256xf32, #tpu.memory_space<vmem>>, %arg3: memref<8x32xf32, #tpu.memory_space<vmem>>, %arg4: memref<2x8xf32, #tpu.memory_space<vmem>>, %arg5: memref<1x32xf32, #tpu.memory_space<vmem>>, %arg6: memref<2x32xf32, #tpu.memory_space<vmem>>, %arg7: memref<8x128xf32, #tpu.memory_space<vmem>>) attributes {dimension_semantics = [#tpu.dimension_semantics<parallel>, #tpu.dimension_semantics<arbitrary>], iteration_bounds = array<i64: 1, 1>, scalar_prefetch = 0 : i64, scratch_operands = 1 : i64, tpu.core_type = #tpu.core_type<tc>, window_params = [{transform_indices = @transform_0, window_bounds = array<i64: 8, 256>}, {pipeline_mode = #tpu.pipeline_mode<synchronous>, transform_indices = @transform_1, window_bounds = array<i64: 8, 32>}, {pipeline_mode = #tpu.pipeline_mode<synchronous>, transform_indices = @transform_2, window_bounds = array<i64: 2, 8>}, {pipeline_mode = #tpu.pipeline_mode<synchronous>, transform_indices = @transform_3, window_bounds = array<i64: 1, 32>}, {transform_indices = @transform_4, window_bounds = array<i64: 2, 32>}]} {
    %c0_i32 = arith.constant 0 : i32
    %0 = arith.cmpi eq, %arg1, %c0_i32 : i32
    %1 = arith.extui %0 : i1 to i32
    %c0_i32_0 = arith.constant 0 : i32
    %2 = arith.cmpi ne, %1, %c0_i32_0 : i32
    scf.if %2 {
      %cst = arith.constant 0.000000e+00 : f32
      %12 = vector.broadcast %cst : f32 to vector<8x128xf32>
      %c0_9 = arith.constant 0 : index
      %c0_10 = arith.constant 0 : index
      %13 = vector.load %arg7[%c0_9, %c0_10] : memref<8x128xf32, #tpu.memory_space<vmem>>, vector<8x128xf32>
      tpu.vector_store %arg7[%c0_9, %c0_10], %12 {strides = array<i32>} : memref<8x128xf32, #tpu.memory_space<vmem>>, vector<8x128xf32>,
    } else {
    }
    %c0 = arith.constant 0 : index
    %c0_1 = arith.constant 0 : index
    %3 = vector.load %arg2[%c0, %c0_1] : memref<8x256xf32, #tpu.memory_space<vmem>>, vector<8x128xf32>
    %c0_2 = arith.constant 0 : index
    %c128 = arith.constant 128 : index
    %4 = vector.load %arg2[%c0_2, %c128] : memref<8x256xf32, #tpu.memory_space<vmem>>, vector<8x128xf32>
    %5 = arith.addf %3, %4 : vector<8x128xf32>
    %c0_3 = arith.constant 0 : index
    %c0_4 = arith.constant 0 : index
    %6 = vector.load %arg7[%c0_3, %c0_4] : memref<8x128xf32, #tpu.memory_space<vmem>>, vector<8x128xf32>
    %7 = arith.addf %6, %5 : vector<8x128xf32>
    %c0_5 = arith.constant 0 : index
    %c0_6 = arith.constant 0 : index
    %8 = vector.load %arg7[%c0_5, %c0_6] : memref<8x128xf32, #tpu.memory_space<vmem>>, vector<8x128xf32>
    tpu.vector_store %arg7[%c0_5, %c0_6], %7 {strides = array<i32>} : memref<8x128xf32, #tpu.memory_space<vmem>>, vector<8x128xf32>,
    %c0_i32_7 = arith.constant 0 : i32
    %9 = arith.cmpi eq, %arg1, %c0_i32_7 : i32
    %10 = arith.extui %9 : i1 to i32
    %c0_i32_8 = arith.constant 0 : i32
    %11 = arith.cmpi ne, %10, %c0_i32_8 : i32
    scf.if %11 {
      %c0_9 = arith.constant 0 : index
      %c0_10 = arith.constant 0 : index
      %12 = vector.load %arg7[%c0_9, %c0_10] : memref<8x128xf32, #tpu.memory_space<vmem>>, vector<8x128xf32>
      %cst = arith.constant dense<0.000000e+00> : vector<8xf32>
      %13 = vector.multi_reduction <add>, %12, %cst [1] : vector<8x128xf32> to vector<8xf32>
      %14 = vector.shape_cast %13 : vector<8xf32> to vector<8x1xf32>
      %c0_11 = arith.constant 0 : index
      %c0_12 = arith.constant 0 : index
      %15 = vector.load %arg3[%c0_11, %c0_12] : memref<8x32xf32, #tpu.memory_space<vmem>>, vector<8x32xf32>
      %16 = vector.broadcast %14 : vector<8x1xf32> to vector<8x32xf32>
      %17 = arith.mulf %16, %15 : vector<8x32xf32>
      %c0_13 = arith.constant 0 : index
      %c0_14 = arith.constant 0 : index
      %18 = vector.load %arg4[%c0_13, %c0_14] : memref<2x8xf32, #tpu.memory_space<vmem>>, vector<2x8xf32>
      %cst_15 = arith.constant dense<0.000000e+00> : vector<2x32xf32>
      %19 = tpu.matmul %18, %17, %cst_15 {dimension_numbers = #tpu.dot_dimension_numbers<[1], [0], [0], [1], [0, 0, 1, 1], [], []>} : vector<2x8xf32>, vector<8x32xf32>, vector<2x32xf32> -> vector<2x32xf32>
      %c0_16 = arith.constant 0 : index
      %c0_17 = arith.constant 0 : index
      %20 = vector.load %arg5[%c0_16, %c0_17] : memref<1x32xf32, #tpu.memory_space<vmem>>, vector<1x32xf32>
      %21 = vector.broadcast %20 : vector<1x32xf32> to vector<2x32xf32>
      %22 = arith.addf %19, %21 : vector<2x32xf32>
      %23 = arith.negf %22 : vector<2x32xf32>
      %24 = math.exp %23 : vector<2x32xf32>
      %cst_18 = arith.constant 1.000000e+00 : f32
      %25 = vector.broadcast %cst_18 : f32 to vector<2x32xf32>
      %26 = arith.addf %25, %24 : vector<2x32xf32>
      %27 = arith.divf %25, %26 : vector<2x32xf32>
      %28 = arith.mulf %22, %27 : vector<2x32xf32>
      %c0_19 = arith.constant 0 : index
      %c0_20 = arith.constant 0 : index
      %29 = vector.load %arg6[%c0_19, %c0_20] : memref<2x32xf32, #tpu.memory_space<vmem>>, vector<2x32xf32>
      tpu.vector_store %arg6[%c0_19, %c0_20], %28 {strides = array<i32>} : memref<2x32xf32, #tpu.memory_space<vmem>>, vector<2x32xf32>,
    } else {
    }
    return
  }
  func.func @transform_0(%arg0: i32, %arg1: i32) -> (i32, i32) {
    %c0_i32 = arith.constant 0 : i32
    return %arg0, %arg1 : i32, i32
  }
  func.func @transform_1(%arg0: i32, %arg1: i32) -> (i32, i32) {
    %c0_i32 = arith.constant 0 : i32
    %c0_i32_0 = arith.constant 0 : i32
    %c0_i32_1 = arith.constant 0 : i32
    return %c0_i32, %c0_i32_0 : i32, i32
  }
  func.func @transform_2(%arg0: i32, %arg1: i32) -> (i32, i32) {
    %c0_i32 = arith.constant 0 : i32
    %c0_i32_0 = arith.constant 0 : i32
    %c0_i32_1 = arith.constant 0 : i32
    return %c0_i32, %c0_i32_0 : i32, i32
  }
  func.func @transform_3(%arg0: i32, %arg1: i32) -> (i32, i32) {
    %c0_i32 = arith.constant 0 : i32
    %c0_i32_0 = arith.constant 0 : i32
    %c0_i32_1 = arith.constant 0 : i32
    return %c0_i32, %c0_i32_0 : i32, i32
  }
  func.func @transform_4(%arg0: i32, %arg1: i32) -> (i32, i32) {
    %c0_i32 = arith.constant 0 : i32
    %c0_i32_0 = arith.constant 0 : i32
    return %arg0, %c0_i32 : i32, i32
  }
}

</mosaic_0001>

<bundles_post_ra>
// kernel: tpu_custom_call.1
= control target key start
LH: loop header
LB: loop body
LE: loop exit
PB: predicated region body
PF: predicated region fallthrough
CT: control target
= control target key end

     0   :  { %9 = vsyncpa [#allocation4], 0  ;;  %s331_s0 = inlined_call_operand.hbm [shape: f32[8,256], index: 0, kind: input, shape index: {}]   ;;  %s332_s1 = inlined_call_operand.hbm [shape: f32[8,32], index: 1, kind: input, shape index: {}]   ;;  %s333_s2 = inlined_call_operand.vmem [shape: f32[2,8], index: 2, kind: input, shape index: {}]   ;;  %s334_s3 = inlined_call_operand.vmem [shape: f32[1,32], index: 3, kind: input, shape index: {}]   ;;  %s335_s4 = inlined_call_operand.hbm [shape: f32[2,32], index: 4, kind: output, shape index: {}]  }
   0x1   :  { %10 = vsyncpa [#allocation7], 0 }
   0x2   :  { %11 = vsyncpa [#allocation5], 0  ;;  %s259_s15 = smov [#allocation3]   ;;  %s260_s17 = smov [#allocation6]  }
   0x3   :  { %s18_s16 = sshll.u32 %s259_s15, 4  ;;  %s28_s18 = sshll.u32 %s260_s17, 4  ;;  %s19_s16 = int_to_ptr.vmem [resolvable:$true] %s18_s16  ;;  %s29_s18 = int_to_ptr.vmem [resolvable:$true] %s28_s18 }
   0x4   :  { %s187_s21 = scalar_lea.hbm %s331_s0, 256 }
   0x5   :  { %p188_p0 = scmp.ne.s32.totalorder %s331_s0, %s187_s21  ;;  %p191_p1 = scmp.lt.u32.totalorder %s187_s21, %s331_s0 }
   0x7   :  { %p193_p2 = pnand %p191_p1, %p188_p0 }
   0x9   :  { %196 = shalt.err (!%p193_p2)
}
   0xa   :  { %s197_s26 = scalar_lea.vmem %s19_s16, 256  ;;  %p202_p4 = scmp.lt.s32.totalorder %s19_s16, %s19_s16 }
   0xb   :  { %p198_p3 = scmp.ne.s32.totalorder %s19_s16, %s197_s26  ;;  %p203_p5 = scmp.lt.s32.totalorder %s197_s26, %s197_s26 }
   0xd   :  { %p204_p6 = por %p203_p5, %p202_p4 }
   0xf   :  { %p205_p7 = pnand %p204_p6, %p198_p3 }
  0x11   :  { %208 = shalt.err (!%p205_p7)
}
  0x12   :  { %21 = dma.hbm_to_vmem [thread:$0]  %s331_s0, 256, %s19_s16, [#allocation4]  }
  0x13   :  { %s209_s5 = scalar_lea.hbm %s332_s1, 128 }
  0x14   :  { %p210_p8 = scmp.ne.s32.totalorder %s332_s1, %s209_s5  ;;  %p213_p9 = scmp.lt.u32.totalorder %s209_s5, %s332_s1 }
  0x16   :  { %p215_p10 = pnand %p213_p9, %p210_p8 }
  0x18   :  { %218 = shalt.err (!%p215_p10)
}
  0x19   :  { %s219_s10 = scalar_lea.vmem %s29_s18, 128  ;;  %p224_p12 = scmp.lt.s32.totalorder %s29_s18, %s29_s18 }
  0x1a   :  { %p220_p11 = scmp.ne.s32.totalorder %s29_s18, %s219_s10  ;;  %p225_p13 = scmp.lt.s32.totalorder %s219_s10, %s219_s10 }
  0x1c   :  { %p226_p0 = por %p225_p13, %p224_p12 }
  0x1e   :  { %p227_p1 = pnand %p226_p0, %p220_p11 }
  0x20   :  { %230 = shalt.err (!%p227_p1)
}
  0x21   :  { %31 = dma.hbm_to_vmem [thread:$0]  %s332_s1, 128, %s29_s18, [#allocation7]  }
  0x22   :  { %253 = dma.done.wait [#allocation4], 256  }
  0x23   :  { %254 = vsyncadd [#allocation4], 4294967040 }
  0x24   :  { %255 = dma.done.wait [#allocation7], 128  }
  0x25   :  { %256 = vsyncadd [#allocation7], 4294967168  ;;  %v47_v0 = vld [vmem:[#allocation3] sm:$0xff]  ;;  %v48_v1 = vld [vmem:[#allocation3 + $0x8] sm:$0xff]  ;;  %v261_v3 = vmov 0.0   ;;  %vm262_vm0 = vmmov 0  }
  0x26   :  { %v49_v2 = vadd.f32 %v48_v1, %v47_v0  ;;  %173 = vmatprep.subr.mxu0 %v261_v3  ;;  %175 = vmatprep.mubr.msk.f32.mxu0 %vm262_vm0, %v261_v3  ;;  %v59_v4 = vld [vmem:[#allocation6] sm:$0xff]  ;;  %v61_v7 = vld [vmem:[%s333_s2] sm:$0x3]  ;;  %vm69_vm1 = vcmask 64512   ;;  %s263_s15 = smov [#allocation8]   ;;  %vm150_vm2 = vcmask 254976  }
  0x27   :  { %v168_v8 = vld [vmem:[%s334_s3] ss:$0 sm:$0xff]  ;;  %s158_s16 = sshll.u32 %s263_s15, 4  ;;  %s159_s16 = int_to_ptr.vmem [resolvable:$true] %s158_s16 }
  0x28   :  { %57 = vadd.xlane.f32.xlu0 %v49_v2  ;;  %s231_s2 = scalar_lea.vmem %s159_s16, 32  ;;  %p236_p3 = scmp.lt.s32.totalorder %s159_s16, %s159_s16 }
  0x29   :  { %p232_p2 = scmp.ne.s32.totalorder %s159_s16, %s231_s2  ;;  %p237_p4 = scmp.lt.s32.totalorder %s231_s2, %s231_s2 }
  0x2b   :  { %p238_p5 = por %p237_p4, %p236_p3 }
  0x2d   :  { %p239_p6 = pnand %p238_p5, %p232_p2 }
  0xb5   :  { %v58_v5 = vpop.xlane.xlu0 %57 }
  0xb6   :  { %v60_v6 = vmul.f32 %v59_v4, %v58_v5 }
  0xb8   :  { %174 = vmatpush3.msra.mxu0 %v60_v6 }
  0xb9   :  { %176 = vmatmul.mubr.msk.f32.vlgmr.msra.gmra.mrb[0].mxu0 %vm69_vm1, %v61_v7 }
 0x18c   :  { %v139_v9 = vpop.f32.mrb[0].mxu0 }
 0x18d   :  { %v140_v10 = vadd.f32 %v168_v8, %v139_v9  ;;  %v177_v11 = vpop.f32.mrb[1].mxu0 }
 0x18f   :  { %v170_v12 = vmul.f32 -1.442695, %v140_v10 }
 0x191   :  { %183 = vpow2.f32 %v170_v12 }
 0x19b   :  { %v184_v13 = vpop.eup %183 }
 0x19c   :  { %v146_v14 = vadd.f32 1.0, %v184_v13 }
 0x19e   :  { %185 = vrcp.f32 %v146_v14 }
 0x1a8   :  { %v186_v15 = vpop.eup %185 }
 0x1a9   :  { %v149_v16 = vmul.f32 %v186_v15, %v140_v10 }
 0x1ab   :  { %151 = vst.msk [vmem:[#allocation8] sm:$0x3] %vm150_vm2, %v149_v16 }
 0x1ac   :  { %242 = shalt.err (!%p239_p6)
}
 0x1ad   :  { %s243_s18 = scalar_lea.hbm %s335_s4, 32 }
 0x1ae   :  { %p244_p7 = scmp.ne.s32.totalorder %s335_s4, %s243_s18  ;;  %p247_p8 = scmp.lt.u32.totalorder %s243_s18, %s335_s4 }
 0x1b0   :  { %p249_p9 = pnand %p247_p8, %p244_p7 }
 0x1b2   :  { %252 = shalt.err (!%p249_p9)
}
 0x1b3   :  { %161 = dma.vmem_to_hbm [thread:$0]  %s159_s16, 32, %s335_s4, [#allocation5]  }
 0x1b4   :  { %257 = dma.done.wait [#allocation5], 32  }
 0x1b5   :  { %258 = vsyncadd [#allocation5], 4294967264 }
 0x1b6   :  { %165 = vsyncpa [#allocation4], 1 }
 0x1b7   :  { %166 = vsyncpa [#allocation7], 1 }
 0x1b8   :  { %167 = vsyncpa [#allocation5], 1 }

</bundles_post_ra>
